<compile_context>
chip_gen: v6e
topology: v6e:2x2x1
jax: 0.10.0
libtpu: 0.0.40
codegen_flags: <defaults>
</compile_context>

<pallas_src>
import jax
import jax.numpy as jnp
from jax.experimental import pallas as pl
from jax.experimental.pallas import tpu as pltpu


def _fused_linear_kernel(xt_ref, w_ref, b_ref, o_ref):
    # xt: (2F, TB)   w: (1, 2F)   b: (1, 1) in SMEM   o: (1, TB)
    y = jnp.dot(w_ref[...], xt_ref[...], preferred_element_type=jnp.float32)
    o_ref[...] = (y + b_ref[0, 0]).astype(o_ref.dtype)


def multiple_input_net(x1, x2, w1, b1, w2, b2, *, tb_max=512):
    """dense1(x1) + dense2(x2)  ==  x1 @ w1.T + b1 + x2 @ w2.T + b2.

    x1, x2 : (B, F) float32
    w1, w2 : (O, F) float32   (PyTorch nn.Linear weight layout)
    b1, b2 : (O,)   float32
    returns: (B, O) float32
    """
    B, F = x1.shape
    O = w1.shape[0]
    assert O == 1, "kernel specialised for Linear(*, 1) (scalar bias in SMEM)"

    # --- operand fusion (cheap XLA-side layout plumbing, not compute) ------
    xt = jnp.concatenate([x1, x2], axis=1).T            # (2F, B), batch -> lanes
    w = jnp.concatenate([w1, w2], axis=1)                # (1, 2F)
    b = (b1 + b2).reshape(1, 1).astype(jnp.float32)      # (1, 1) scalar -> SMEM

    K = 2 * F
    # Batch tile: full B for small inputs; lane-aligned 512 otherwise
    # (512 keeps 2 double-buffered x tiles + out tile well inside v7x VMEM).
    tb = B if B <= tb_max else tb_max
    grid = (pl.cdiv(B, tb),)

    out_t = pl.pallas_call(
        _fused_linear_kernel,
        out_shape=jax.ShapeDtypeStruct((1, B), jnp.float32),
        grid=grid,
        in_specs=[
            pl.BlockSpec((K, tb), lambda i: (0, i)),      # fused input tile
            pl.BlockSpec((1, K), lambda i: (0, 0)),       # fused weight, resident
            pl.BlockSpec(memory_space=pltpu.SMEM),        # pre-summed bias scalar
        ],
        out_specs=pl.BlockSpec((1, tb), lambda i: (0, i)),  # lane-dense (1, TB)
        compiler_params=pltpu.CompilerParams(
            dimension_semantics=("parallel",)),
    )(xt, w, b)

    return out_t.T                                        # (B, O)


if __name__ == "__main__":
    key = jax.random.PRNGKey(0)
    k_x1, k_x2, k_w1, k_b1, k_w2, k_b2 = jax.random.split(key, 6)

    B, F, O = 8, 10, 1  # Linear(10, 1) on both branches

    x1 = jax.random.normal(k_x1, (B, F), dtype=jnp.float32)
    x2 = jax.random.normal(k_x2, (B, F), dtype=jnp.float32)

    # Parameters in PyTorch nn.Linear layout: weight (O, F), bias (O,).
    bound = 1.0 / jnp.sqrt(jnp.float32(F))
    w1 = jax.random.uniform(k_w1, (O, F), minval=-bound, maxval=bound, dtype=jnp.float32)
    b1 = jax.random.uniform(k_b1, (O,), minval=-bound, maxval=bound, dtype=jnp.float32)
    w2 = jax.random.uniform(k_w2, (O, F), minval=-bound, maxval=bound, dtype=jnp.float32)
    b2 = jax.random.uniform(k_b2, (O,), minval=-bound, maxval=bound, dtype=jnp.float32)

    out = multiple_input_net(x1, x2, w1, b1, w2, b2)
    out = jax.block_until_ready(out)

    # Reference check in plain JAX (torch semantics: x @ W.T + b).
    ref = x1 @ w1.T + b1 + x2 @ w2.T + b2
    assert out.shape == (B, O)
    assert jnp.allclose(out, ref, atol=1e-5), "mismatch vs reference"

    print("KERNEL_OK")
</pallas_src>

<mosaic_0001>
module attributes {stable_mosaic.version = 11 : i64} {
  func.func @_fused_linear_kernel(%arg0: i32, %arg1: memref<20x8xf32, #tpu.memory_space<vmem>>, %arg2: memref<1x20xf32, #tpu.memory_space<vmem>>, %arg3: memref<1x1xf32, #tpu.memory_space<smem>>, %arg4: memref<1x8xf32, #tpu.memory_space<vmem>>) attributes {dimension_semantics = [#tpu.dimension_semantics<parallel>], iteration_bounds = array<i64: 1>, scalar_prefetch = 0 : i64, scratch_operands = 0 : i64, tpu.core_type = #tpu.core_type<tc>, window_params = [{transform_indices = @transform_0, window_bounds = array<i64: 20, 8>}, {pipeline_mode = #tpu.pipeline_mode<synchronous>, transform_indices = @transform_1, window_bounds = array<i64: 1, 20>}, {transform_indices = @transform_2, window_bounds = array<i64: 1, 1>}, {transform_indices = @transform_3, window_bounds = array<i64: 1, 8>}]} {
    %c0 = arith.constant 0 : index
    %c0_0 = arith.constant 0 : index
    %0 = vector.load %arg2[%c0, %c0_0] : memref<1x20xf32, #tpu.memory_space<vmem>>, vector<1x20xf32>
    %c0_1 = arith.constant 0 : index
    %c0_2 = arith.constant 0 : index
    %1 = vector.load %arg1[%c0_1, %c0_2] : memref<20x8xf32, #tpu.memory_space<vmem>>, vector<20x8xf32>
    %cst = arith.constant dense<0.000000e+00> : vector<1x8xf32>
    %2 = tpu.matmul %0, %1, %cst {dimension_numbers = #tpu.dot_dimension_numbers<[1], [0], [0], [1], [0, 0, 1, 1], [], []>} : vector<1x20xf32>, vector<20x8xf32>, vector<1x8xf32> -> vector<1x8xf32>
    %c0_3 = arith.constant 0 : index
    %c0_4 = arith.constant 0 : index
    %3 = memref.load %arg3[%c0_3, %c0_4] : memref<1x1xf32, #tpu.memory_space<smem>>
    %4 = vector.broadcast %3 : f32 to vector<1x8xf32>
    %5 = arith.addf %2, %4 : vector<1x8xf32>
    %c0_5 = arith.constant 0 : index
    %c0_6 = arith.constant 0 : index
    %6 = vector.load %arg4[%c0_5, %c0_6] : memref<1x8xf32, #tpu.memory_space<vmem>>, vector<1x8xf32>
    tpu.vector_store %arg4[%c0_5, %c0_6], %5 {strides = array<i32>} : memref<1x8xf32, #tpu.memory_space<vmem>>, vector<1x8xf32>,
    return
  }
  func.func @transform_0(%arg0: i32) -> (i32, i32) {
    %c0_i32 = arith.constant 0 : i32
    %c0_i32_0 = arith.constant 0 : i32
    return %c0_i32, %arg0 : i32, i32
  }
  func.func @transform_1(%arg0: i32) -> (i32, i32) {
    %c0_i32 = arith.constant 0 : i32
    %c0_i32_0 = arith.constant 0 : i32
    %c0_i32_1 = arith.constant 0 : i32
    return %c0_i32, %c0_i32_0 : i32, i32
  }
  func.func @transform_2(%arg0: i32) -> (i32, i32) {
    %c0_i32 = arith.constant 0 : i32
    %c0_i32_0 = arith.constant 0 : i32
    %c0_i32_1 = arith.constant 0 : i32
    return %c0_i32, %c0_i32_0 : i32, i32
  }
  func.func @transform_3(%arg0: i32) -> (i32, i32) {
    %c0_i32 = arith.constant 0 : i32
    %c0_i32_0 = arith.constant 0 : i32
    return %c0_i32, %arg0 : i32, i32
  }
}

</mosaic_0001>

<bundles_post_ra>
// kernel: tpu_custom_call.1
= control target key start
LH: loop header
LB: loop body
LE: loop exit
PB: predicated region body
PF: predicated region fallthrough
CT: control target
= control target key end

     0   :  { %vm26_vm0 = vcmask 1043456   ;;  %v156_v1 = vmov 0.0   ;;  %s197_s0 = inlined_call_operand.vmem [shape: f32[20,8], index: 0, kind: input, shape index: {}]   ;;  %s198_s1 = inlined_call_operand.vmem [shape: f32[1,20], index: 1, kind: input, shape index: {}]   ;;  %s199_s2 = inlined_call_operand.<no memory space> [shape: f32[1,1], index: 2, kind: input, shape index: {}]   ;;  %s200_s3 = inlined_call_operand.hbm [shape: f32[1,8], index: 3, kind: output, shape index: {}]  }
   0x1   :  { %v19_v0 = vld [vmem:[%s197_s0 + $0x10] sm:$0xf]  ;;  %122 = vmatprep.subr.mxu0 %v156_v1  ;;  %v18_v2 = vld [vmem:[%s197_s0 + $0x8] sm:$0xff] }
   0x2   :  { %9 = vsyncpa [#allocation4], 0  ;;  %123 = vmatpush3.msk.msra.mxu0 %vm26_vm0, %v19_v0  ;;  %vm157_vm1 = vmmov 0   ;;  %v17_v3 = vld [vmem:[%s197_s0] sm:$0xff]  ;;  %vm22_vm2 = vcmask 162816   ;;  %v21_v5 = vstv %s199_s2  ;;  %s158_s22 = smov [#allocation3]  }
   0x3   :  { %128 = vmatprep.mubr.msk.f32.mxu0 %vm157_vm1, %v156_v1  ;;  %124 = vmatprep.subr.mxu0 %v156_v1  ;;  %v16_v4 = vld [vmem:[%s198_s1] sm:$0x1]  ;;  %s108_s23 = sshll.u32 %s158_s22, 4  ;;  %vm100_vm3 = vcmask 57344   ;;  %s109_s23 = int_to_ptr.vmem [resolvable:$true] %s108_s23 }
   0x4   :  { %125 = vmatpush3.msra.mxu0 %v18_v2  ;;  %s134_s0 = scalar_lea.vmem %s109_s23, 16  ;;  %s138_s24 = scalar_lea.vmem %s109_s23, 32 }
   0x5   :  { %126 = vmatprep.subr.mxu0 %v156_v1  ;;  %p135_p0 = scmp.ne.s32.totalorder %s109_s23, %s134_s0  ;;  %p139_p1 = scmp.lt.s32.totalorder %s109_s23, %s109_s23 }
   0x6   :  { %127 = vmatpush3.msra.mxu0 %v17_v3  ;;  %p140_p2 = scmp.lt.s32.totalorder %s138_s24, %s134_s0 }
   0x7   :  { %129 = vmatmul.mubr.msk.f32.vlgmr.msra.gmra.mxu0 %vm22_vm2, %v16_v4 }
   0x8   :  { %p141_p3 = por %p140_p2, %p139_p1 }
   0xa   :  { %p142_p4 = pnand %p141_p3, %p135_p0 }
  0xc7   :  { %v96_v6 = vpop.f32.mrf.mxu0 }
  0xc8   :  { %v97_v7 = vadd.f32 %v96_v6, %v21_v5 }
  0xc9   :  { %v130_v8 = vpop.f32.mrf.mxu0 }
  0xca   :  { %101 = vst.msk [vmem:[#allocation3] sm:$0x1] %vm100_vm3, %v97_v7 }
  0xcb   :  { %145 = shalt.err (!%p142_p4)
}
  0xcc   :  { %111 = dma.vmem_to_hbm [thread:$0]  %s109_s23, 16, %s200_s3, [#allocation4]  }
  0xcd   :  { %154 = dma.done.wait [#allocation4], 16  }
  0xce   :  { %155 = vsyncadd [#allocation4], 4294967280 }
  0xcf   :  { %115 = vsyncpa [#allocation4], 1 }

</bundles_post_ra>
